<compile_context>
chip_gen: v6e
topology: v6e:2x2x1
jax: 0.10.0
libtpu: 0.0.40
codegen_flags: <defaults>
</compile_context>

<pallas_src>
import jax
import jax.numpy as jnp
import numpy as np
from jax.experimental import pallas as pl
from jax.experimental.pallas import tpu as pltpu

NUM_FRAMES = 10                      # T  (RNN batch axis)
NUM_POINTS = 64                      # P
NUM_FEATURES = 4                     # F
INTER = 64                           # intermidiate_channels
LATENT = 16                          # latent_dimension
IN_CH = NUM_POINTS * NUM_FEATURES    # 256
T_PAD = 16                           # frames padded to a bf16-sublane-tile multiple
LANES = 128                          # packed-slab lane width
B_ROWS = 16                          # bias slab rows (10 real, padded to 16)

# Packed bf16 weight-slab row layout (insertion order == slab order).
_SIZES = dict(fc=IN_CH, zmv=INTER, eih0=INTER, ehh0=LATENT,
              e1ih=LATENT, e1hh=LATENT, e2ih=LATENT, e2hh=LATENT,
              d0ih=LATENT, d0hh=LATENT, d1ih=LATENT, d1hh=LATENT,
              d2ih=LATENT, d2hh=LATENT, xl=LATENT, p=INTER)
_OFF = {}
_row = 0
for _k, _s in _SIZES.items():
    _OFF[_k] = _row
    _row += _s
W_ROWS = _row                        # 640
# every block starts/ends on a bf16 sublane-tile boundary (16 rows) -> clean slices
for _k in _SIZES:
    assert _OFF[_k] % 16 == 0 and _SIZES[_k] % 16 == 0, _k

# bias slab row assignment (single source of truth for kernel + pack_params)
_BROWS = dict(fc=0, zmv=1, e0=2, e1=3, e2=4, d0=5, d1=6, d2=7, xl=8, p=9)


def hvrae_kernel(x_ref, eps_ref, w_ref, b_ref, out_ref):
    f32, bf16 = jnp.float32, jnp.bfloat16
    BT = x_ref.shape[0]
    B = BT // T_PAD                  # RNN sequence length (torch batch_first=False)

    def mm(a, b):                    # bf16 x bf16 -> f32 accumulation on the MXU
        return jnp.dot(a, b, preferred_element_type=f32)

    def W(name):                     # static, 16-row-aligned slab slice (bf16)
        o = _OFF[name]
        return w_ref[o:o + _SIZES[name], :]

    biases = b_ref[...]                                   # (16,128) f32

    def brow(name):
        r = _BROWS[name]
        return biases[r:r + 1, :]

    # biases used inside the unrolled loop: broadcast ONCE (JAX does not CSE them)
    e_b1 = jnp.broadcast_to(brow("e1"), (T_PAD, LANES))
    e_b2 = jnp.broadcast_to(brow("e2"), (T_PAD, LANES))
    d_b1 = jnp.broadcast_to(brow("d1"), (T_PAD, LANES))
    d_b2 = jnp.broadcast_to(brow("d2"), (T_PAD, LANES))
    xl_b = jnp.broadcast_to(brow("xl"), (T_PAD, LANES))
    p_b = jnp.broadcast_to(brow("p"), (T_PAD, LANES))
    d_b0 = brow("d0")                                     # stays (1,128): added pre-broadcast

    # ---- encoder front end, batched over all B*T_PAD rows (off the recurrence) ----
    # x / eps / weights already stored bf16 by the wrapper -> no in-kernel pack/cast.
    h = jnp.tanh(mm(x_ref[...], W("fc")) + brow("fc"))            # (BT,128) f32
    zz = mm(h[:, :INTER].astype(bf16), W("zmv")) + brow("zmv")    # [z_mean | z_log_var]
    z = zz[:, :INTER] + jnp.exp(0.5 * zz[:, INTER:]) * eps_ref[...]  # (BT,64) f32 sample
    # state-independent input->hidden part of encode-RNN layer 0 (+ its fused bias)
    zW = mm(z.astype(bf16), W("eih0")) + brow("e0")               # (BT,128), lanes 0:16 live

    # ---- loop weights: eleven 1-vreg bf16 tiles live across the short unroll ----
    w_ehh0 = W("ehh0")
    w_e1i, w_e1h = W("e1ih"), W("e1hh")
    w_e2i, w_e2h = W("e2ih"), W("e2hh")
    w_d0i, w_d0h = W("d0ih"), W("d0hh")
    w_d1i, w_d1h = W("d1ih"), W("d1hh")
    w_d2i, w_d2h = W("d2ih"), W("d2hh")
    w_xl, w_p = W("xl"), W("p")

    # ---- stacked 3-layer tanh-RNN encode/decode recurrence over the B axis ----
    zeros = jnp.zeros((T_PAD, LATENT), bf16)
    h1 = h2 = h3 = zeros
    g1 = g2 = g3 = zeros
    for b in range(B):                                    # static unroll, B is tiny
        zW_b = zW[b * T_PAD:(b + 1) * T_PAD, :]           # aligned (T_PAD,128) slice
        # encode RNN — two-dot (ih + hh) accumulate form
        h1 = jnp.tanh(zW_b + mm(h1, w_ehh0))[:, :LATENT].astype(bf16)
        h2 = jnp.tanh(mm(h1, w_e1i) + mm(h2, w_e1h) + e_b1)[:, :LATENT].astype(bf16)
        h3 = jnp.tanh(mm(h2, w_e2i) + mm(h3, w_e2h) + e_b2)[:, :LATENT].astype(bf16)
        # encoder_feature[:, -1, :] + RepeatVector: dot the full state, pick the
        # frame-(T-1) row of the OUTPUT, fold the bias, broadcast once.
        efw = mm(h3, w_d0i)[NUM_FRAMES - 1:NUM_FRAMES, :] + d_b0          # (1,128)
        g1 = jnp.tanh(jnp.broadcast_to(efw, (T_PAD, LANES))
                      + mm(g1, w_d0h))[:, :LATENT].astype(bf16)
        g2 = jnp.tanh(mm(g1, w_d1i) + mm(g2, w_d1h) + d_b1)[:, :LATENT].astype(bf16)
        g3 = jnp.tanh(mm(g2, w_d2i) + mm(g3, w_d2h) + d_b2)[:, :LATENT].astype(bf16)
        # tail (off the carried chain): x_latent -> tanh -> fused p projection,
        # one lane-dense (T_PAD,128) store per step, no growing live ranges.
        xl = jnp.tanh(mm(g3, w_xl) + xl_b)                                # lanes 0:64 live
        out_ref[b * T_PAD:(b + 1) * T_PAD, :] = mm(xl[:, :INTER].astype(bf16), w_p) + p_b
    # (flip(-2), RepeatVector(num_points) and the final view happen in the wrapper)


def pack_params(params):
    """Pack the 28 parameter tensors into ONE bf16 weight slab + ONE f32 bias slab.
    Call ONCE at model init (outside the jitted per-call path)."""
    (fc_w, fc_b, zm_w, zm_b, zlv_w, zlv_b,
     e_wih0, e_whh0, e_b0, e_wih1, e_whh1, e_b1, e_wih2, e_whh2, e_b2,
     d_wih0, d_whh0, d_b0, d_wih1, d_whh1, d_b1, d_wih2, d_whh2, d_b2,
     xl_w, xl_b, p_w, p_b) = params

    def pad_lanes(a):
        return jnp.pad(a, ((0, 0), (0, LANES - a.shape[1])))   # zero lane padding

    blocks = dict(
        fc=fc_w,
        zmv=jnp.concatenate([zm_w, zlv_w], axis=1),             # fused z_mean|z_log_var
        eih0=e_wih0, ehh0=e_whh0,
        e1ih=e_wih1, e1hh=e_whh1, e2ih=e_wih2, e2hh=e_whh2,
        d0ih=d_wih0, d0hh=d_whh0, d1ih=d_wih1, d1hh=d_whh1,
        d2ih=d_wih2, d2hh=d_whh2,
        xl=xl_w, p=p_w)
    # layout invariants (the kernel relies on zero-padded dead lanes + these offsets)
    for k in _SIZES:
        assert blocks[k].shape[0] == _SIZES[k] and blocks[k].shape[1] <= LANES, k
    w_slab = jnp.concatenate([pad_lanes(blocks[k]) for k in _SIZES], axis=0)
    assert w_slab.shape == (W_ROWS, LANES)

    b_blocks = dict(fc=fc_b, zmv=jnp.concatenate([zm_b, zlv_b], axis=1),
                    e0=e_b0, e1=e_b1, e2=e_b2, d0=d_b0, d1=d_b1, d2=d_b2,
                    xl=xl_b, p=p_b)
    rows = [None] * len(_BROWS)
    for k, r in _BROWS.items():
        rows[r] = pad_lanes(b_blocks[k])
    b_slab = jnp.concatenate(rows, axis=0)
    b_slab = jnp.pad(b_slab, ((0, B_ROWS - b_slab.shape[0]), (0, 0)))
    # bf16 weights (fc included) + f32 biases: halves the dominant weight DMA and
    # removes the in-kernel casts; all dots accumulate in f32.
    return w_slab.astype(jnp.bfloat16), b_slab.astype(jnp.float32)


def hvrae_forward(x, eps, w_slab, b_slab):
    """x: (B, T, P, F) f32; eps: (B, T, INTER) f32 reparameterization noise.
    w_slab/b_slab: the pre-packed slabs from pack_params (built once at init)."""
    B, T, P, F = x.shape
    assert T == NUM_FRAMES and P * F == IN_CH
    bf16 = jnp.bfloat16
    x_flat = x.reshape(B, T, P * F)                              # nn.Flatten(start_dim=2)
    # pad frame axis to T_PAD so every per-step row slice inside the kernel is aligned;
    # store x / eps in bf16 (the kernel's dot operand dtype).
    x_pad = jnp.zeros((B, T_PAD, P * F), bf16).at[:, :T, :].set(x_flat.astype(bf16))
    eps_pad = jnp.zeros((B, T_PAD, INTER), bf16).at[:, :T, :].set(eps.astype(bf16))

    BT = B * T_PAD
    ce = pl.CostEstimate(
        flops=int(2 * BT * (IN_CH * INTER + INTER * 2 * INTER + INTER * LATENT)
                  + 2 * B * T_PAD * (11 * LATENT * LATENT + LATENT * INTER
                                     + INTER * 2 * F)),
        transcendentals=int(BT * 2 * INTER + B * T_PAD * (6 * LATENT + INTER)),
        bytes_accessed=int(BT * IN_CH * 2 + BT * INTER * 2 + W_ROWS * LANES * 2
                           + B_ROWS * LANES * 4 + BT * LANES * 4))

    vmem = lambda: pl.BlockSpec(memory_space=pltpu.MemorySpace.VMEM)
    out = pl.pallas_call(
        hvrae_kernel,
        out_shape=jax.ShapeDtypeStruct((BT, LANES), jnp.float32),
        in_specs=[vmem(), vmem(), vmem(), vmem()],
        out_specs=vmem(),
        cost_estimate=ce,
    )(x_pad.reshape(BT, P * F), eps_pad.reshape(BT, INTER), w_slab, b_slab)

    out = out.reshape(B, T_PAD, LANES)[:, :T, :2 * F]            # drop row/lane padding
    out = jnp.flip(out, axis=1)                                  # decoder_feature.flip(-2)
    xz = jnp.broadcast_to(out[:, :, None, :], (B, T, P, 2 * F))  # RepeatVector(P, 2)
    return xz.reshape(B, -1, P, 2 * F)


def hvrae_reference(x, eps, params):
    """Pure-JAX mirror of the torch graph with the SAME precision choices as the
    kernel (bf16 dot operands, f32 accumulation) — a restructuring check."""
    (fc_w, fc_b, zm_w, zm_b, zlv_w, zlv_b,
     e_wih0, e_whh0, e_b0, e_wih1, e_whh1, e_b1, e_wih2, e_whh2, e_b2,
     d_wih0, d_whh0, d_b0, d_wih1, d_whh1, d_b1, d_wih2, d_whh2, d_b2,
     xl_w, xl_b, p_w, p_b) = params
    B, T, P, F = x.shape
    bf16, f32 = jnp.bfloat16, jnp.float32

    def bmm(a, b):
        return jnp.dot(a.astype(bf16), b.astype(bf16), preferred_element_type=f32)

    xf = x.reshape(B, T, P * F)
    h = jnp.tanh(bmm(xf, fc_w) + fc_b)
    z_mean = bmm(h, zm_w) + zm_b
    z_log_var = bmm(h, zlv_w) + zlv_b
    eps_q = eps.astype(bf16).astype(f32)                 # kernel stores eps in bf16
    z = z_mean + jnp.exp(0.5 * z_log_var) * eps_q
    h1 = h2 = h3 = jnp.zeros((T, LATENT), f32)
    g1 = g2 = g3 = jnp.zeros((T, LATENT), f32)
    outs = []
    for b in range(B):
        h1 = jnp.tanh(bmm(z[b], e_wih0) + bmm(h1, e_whh0) + e_b0)
        h2 = jnp.tanh(bmm(h1, e_wih1) + bmm(h2, e_whh1) + e_b1)
        h3 = jnp.tanh(bmm(h2, e_wih2) + bmm(h3, e_whh2) + e_b2)
        ef = jnp.broadcast_to(h3[T - 1:T, :], (T, LATENT))
        g1 = jnp.tanh(bmm(ef, d_wih0) + bmm(g1, d_whh0) + d_b0)
        g2 = jnp.tanh(bmm(g1, d_wih1) + bmm(g2, d_whh1) + d_b1)
        g3 = jnp.tanh(bmm(g2, d_wih2) + bmm(g3, d_whh2) + d_b2)
        xl = jnp.tanh(bmm(g3, xl_w) + xl_b)
        outs.append(bmm(xl, p_w) + p_b)
    out = jnp.flip(jnp.stack(outs, axis=0), axis=1)              # (B,T,8)
    xz = jnp.broadcast_to(out[:, :, None, :], (B, T, P, 2 * F))
    return xz.reshape(B, -1, P, 2 * F)


def init_params(key):
    """Deterministic synthetic parameters. Linear weights stored (in, out); each RNN
    layer's two biases (b_ih + b_hh) are fused into one."""
    keys = iter(jax.random.split(key, 64))

    def U(shape, fan_in):
        bound = 1.0 / (fan_in ** 0.5)
        return jax.random.uniform(next(keys), shape, jnp.float32, -bound, bound)

    params = []
    # Encoder: fc (P*F -> 64), z_mean (64 -> 64), z_log_var (64 -> 64)
    params += [U((IN_CH, INTER), IN_CH), U((1, INTER), IN_CH)]
    params += [U((INTER, INTER), INTER), U((1, INTER), INTER)]
    params += [U((INTER, INTER), INTER), U((1, INTER), INTER)]
    # encode RNN: 3 layers, inputs (64, 16, 16), hidden 16
    for in_dim in (INTER, LATENT, LATENT):
        params += [U((in_dim, LATENT), in_dim),
                   U((LATENT, LATENT), LATENT),
                   U((1, LATENT), LATENT)]
    # decode RNN: 3 layers, input 16, hidden 16
    for _ in range(3):
        params += [U((LATENT, LATENT), LATENT),
                   U((LATENT, LATENT), LATENT),
                   U((1, LATENT), LATENT)]
    # x_latent (16 -> 64), fused [p_xz_mean | p_xz_logvar] (64 -> 8)
    params += [U((LATENT, INTER), LATENT), U((1, INTER), LATENT)]
    params += [U((INTER, 2 * NUM_FEATURES), INTER), U((1, 2 * NUM_FEATURES), INTER)]
    return params


if __name__ == "__main__":
    key = jax.random.PRNGKey(0)
    kx, keps, kp = jax.random.split(key, 3)

    B, T, P, F = 2, NUM_FRAMES, NUM_POINTS, NUM_FEATURES
    x = jax.random.normal(kx, (B, T, P, F), jnp.float32)
    # epsilon for self.sample(...): torch.empty(...).normal_() replaced with a
    # deterministic jax.random.normal draw passed into the kernel.
    eps = jax.random.normal(keps, (B, T, INTER), jnp.float32)
    params = init_params(kp)

    # pack ONCE at model init — not inside the per-call jitted path (perf review #1)
    w_slab, b_slab = pack_params(params)
    w_slab, b_slab = jax.block_until_ready((w_slab, b_slab))

    fwd = jax.jit(hvrae_forward)
    out = fwd(x, eps, w_slab, b_slab)
    jax.block_until_ready(out)
    assert out.shape == (B, T, P, 2 * F) and out.dtype == jnp.float32

    # Restructuring check against a pure-JAX mirror that uses the same bf16-operand /
    # f32-accumulate precision as the kernel; the 2e-2 atol is the documented
    # precision budget (covers tanh/exp approximation + accumulation-order deltas).
    ref = jax.jit(hvrae_reference)(x, eps, params)
    np.testing.assert_allclose(np.asarray(out), np.asarray(ref), rtol=0.0, atol=2e-2)

    print("KERNEL_OK")
</pallas_src>

<mosaic_0001>
module attributes {stable_mosaic.version = 11 : i64} {
  func.func @hvrae_kernel(%arg0: memref<32x256xbf16, #tpu.memory_space<vmem>>, %arg1: memref<32x64xbf16, #tpu.memory_space<vmem>>, %arg2: memref<640x128xbf16, #tpu.memory_space<vmem>>, %arg3: memref<16x128xf32, #tpu.memory_space<vmem>>, %arg4: memref<32x128xf32, #tpu.memory_space<vmem>>) attributes {dimension_semantics = [], scalar_prefetch = 0 : i64, scratch_operands = 0 : i64, tpu.core_type = #tpu.core_type<tc>} {
    %c0 = arith.constant 0 : index
    %c0_0 = arith.constant 0 : index
    %0 = vector.load %arg3[%c0, %c0_0] : memref<16x128xf32, #tpu.memory_space<vmem>>, vector<16x128xf32>
    %1 = vector.extract_strided_slice %0 {offsets = [3, 0], sizes = [1, 128], strides = [1, 1]} : vector<16x128xf32> to vector<1x128xf32>
    %2 = vector.shape_cast %1 : vector<1x128xf32> to vector<1x128xf32>
    %3 = vector.broadcast %2 : vector<1x128xf32> to vector<16x128xf32>
    %4 = vector.extract_strided_slice %0 {offsets = [4, 0], sizes = [1, 128], strides = [1, 1]} : vector<16x128xf32> to vector<1x128xf32>
    %5 = vector.shape_cast %4 : vector<1x128xf32> to vector<1x128xf32>
    %6 = vector.broadcast %5 : vector<1x128xf32> to vector<16x128xf32>
    %7 = vector.extract_strided_slice %0 {offsets = [6, 0], sizes = [1, 128], strides = [1, 1]} : vector<16x128xf32> to vector<1x128xf32>
    %8 = vector.shape_cast %7 : vector<1x128xf32> to vector<1x128xf32>
    %9 = vector.broadcast %8 : vector<1x128xf32> to vector<16x128xf32>
    %10 = vector.extract_strided_slice %0 {offsets = [7, 0], sizes = [1, 128], strides = [1, 1]} : vector<16x128xf32> to vector<1x128xf32>
    %11 = vector.shape_cast %10 : vector<1x128xf32> to vector<1x128xf32>
    %12 = vector.broadcast %11 : vector<1x128xf32> to vector<16x128xf32>
    %13 = vector.extract_strided_slice %0 {offsets = [8, 0], sizes = [1, 128], strides = [1, 1]} : vector<16x128xf32> to vector<1x128xf32>
    %14 = vector.shape_cast %13 : vector<1x128xf32> to vector<1x128xf32>
    %15 = vector.broadcast %14 : vector<1x128xf32> to vector<16x128xf32>
    %16 = vector.extract_strided_slice %0 {offsets = [9, 0], sizes = [1, 128], strides = [1, 1]} : vector<16x128xf32> to vector<1x128xf32>
    %17 = vector.shape_cast %16 : vector<1x128xf32> to vector<1x128xf32>
    %18 = vector.broadcast %17 : vector<1x128xf32> to vector<16x128xf32>
    %19 = vector.extract_strided_slice %0 {offsets = [5, 0], sizes = [1, 128], strides = [1, 1]} : vector<16x128xf32> to vector<1x128xf32>
    %c0_1 = arith.constant 0 : index
    %c0_2 = arith.constant 0 : index
    %20 = vector.load %arg0[%c0_1, %c0_2] : memref<32x256xbf16, #tpu.memory_space<vmem>>, vector<32x256xbf16>
    %c0_3 = arith.constant 0 : index
    %c0_4 = arith.constant 0 : index
    %21 = vector.load %arg2[%c0_3, %c0_4] : memref<640x128xbf16, #tpu.memory_space<vmem>>, vector<256x128xbf16>
    %cst = arith.constant dense<0.000000e+00> : vector<32x128xf32>
    %22 = tpu.matmul %20, %21, %cst {dimension_numbers = #tpu.dot_dimension_numbers<[1], [0], [0], [1], [0, 0, 1, 1], [], []>} : vector<32x256xbf16>, vector<256x128xbf16>, vector<32x128xf32> -> vector<32x128xf32>
    %23 = vector.extract_strided_slice %0 {offsets = [0, 0], sizes = [1, 128], strides = [1, 1]} : vector<16x128xf32> to vector<1x128xf32>
    %24 = vector.broadcast %23 : vector<1x128xf32> to vector<32x128xf32>
    %25 = arith.addf %22, %24 : vector<32x128xf32>
    %26 = math.tanh %25 : vector<32x128xf32>
    %27 = vector.extract_strided_slice %26 {offsets = [0, 0], sizes = [32, 64], strides = [1, 1]} : vector<32x128xf32> to vector<32x64xf32>
    %28 = arith.truncf %27 : vector<32x64xf32> to vector<32x64xbf16>
    %c256 = arith.constant 256 : index
    %c0_5 = arith.constant 0 : index
    %29 = vector.load %arg2[%c256, %c0_5] : memref<640x128xbf16, #tpu.memory_space<vmem>>, vector<64x128xbf16>
    %cst_6 = arith.constant dense<0.000000e+00> : vector<32x128xf32>
    %30 = tpu.matmul %28, %29, %cst_6 {dimension_numbers = #tpu.dot_dimension_numbers<[1], [0], [0], [1], [0, 0, 1, 1], [], []>} : vector<32x64xbf16>, vector<64x128xbf16>, vector<32x128xf32> -> vector<32x128xf32>
    %31 = vector.extract_strided_slice %0 {offsets = [1, 0], sizes = [1, 128], strides = [1, 1]} : vector<16x128xf32> to vector<1x128xf32>
    %32 = vector.broadcast %31 : vector<1x128xf32> to vector<32x128xf32>
    %33 = arith.addf %30, %32 : vector<32x128xf32>
    %34 = vector.extract_strided_slice %33 {offsets = [0, 0], sizes = [32, 64], strides = [1, 1]} : vector<32x128xf32> to vector<32x64xf32>
    %35 = vector.extract_strided_slice %33 {offsets = [0, 64], sizes = [32, 64], strides = [1, 1]} : vector<32x128xf32> to vector<32x64xf32>
    %cst_7 = arith.constant 5.000000e-01 : f32
    %36 = vector.broadcast %cst_7 : f32 to vector<32x64xf32>
    %37 = arith.mulf %36, %35 : vector<32x64xf32>
    %38 = math.exp %37 : vector<32x64xf32>
    %c0_8 = arith.constant 0 : index
    %c0_9 = arith.constant 0 : index
    %39 = vector.load %arg1[%c0_8, %c0_9] : memref<32x64xbf16, #tpu.memory_space<vmem>>, vector<32x64xbf16>
    %40 = arith.extf %39 : vector<32x64xbf16> to vector<32x64xf32>
    %41 = arith.mulf %38, %40 : vector<32x64xf32>
    %42 = arith.addf %34, %41 : vector<32x64xf32>
    %43 = arith.truncf %42 : vector<32x64xf32> to vector<32x64xbf16>
    %c320 = arith.constant 320 : index
    %c0_10 = arith.constant 0 : index
    %44 = vector.load %arg2[%c320, %c0_10] : memref<640x128xbf16, #tpu.memory_space<vmem>>, vector<64x128xbf16>
    %cst_11 = arith.constant dense<0.000000e+00> : vector<32x128xf32>
    %45 = tpu.matmul %43, %44, %cst_11 {dimension_numbers = #tpu.dot_dimension_numbers<[1], [0], [0], [1], [0, 0, 1, 1], [], []>} : vector<32x64xbf16>, vector<64x128xbf16>, vector<32x128xf32> -> vector<32x128xf32>
    %46 = vector.extract_strided_slice %0 {offsets = [2, 0], sizes = [1, 128], strides = [1, 1]} : vector<16x128xf32> to vector<1x128xf32>
    %47 = vector.broadcast %46 : vector<1x128xf32> to vector<32x128xf32>
    %48 = arith.addf %45, %47 : vector<32x128xf32>
    %c384 = arith.constant 384 : index
    %c0_12 = arith.constant 0 : index
    %49 = vector.load %arg2[%c384, %c0_12] : memref<640x128xbf16, #tpu.memory_space<vmem>>, vector<16x128xbf16>
    %c400 = arith.constant 400 : index
    %c0_13 = arith.constant 0 : index
    %50 = vector.load %arg2[%c400, %c0_13] : memref<640x128xbf16, #tpu.memory_space<vmem>>, vector<16x128xbf16>
    %c416 = arith.constant 416 : index
    %c0_14 = arith.constant 0 : index
    %51 = vector.load %arg2[%c416, %c0_14] : memref<640x128xbf16, #tpu.memory_space<vmem>>, vector<16x128xbf16>
    %c432 = arith.constant 432 : index
    %c0_15 = arith.constant 0 : index
    %52 = vector.load %arg2[%c432, %c0_15] : memref<640x128xbf16, #tpu.memory_space<vmem>>, vector<16x128xbf16>
    %c448 = arith.constant 448 : index
    %c0_16 = arith.constant 0 : index
    %53 = vector.load %arg2[%c448, %c0_16] : memref<640x128xbf16, #tpu.memory_space<vmem>>, vector<16x128xbf16>
    %c464 = arith.constant 464 : index
    %c0_17 = arith.constant 0 : index
    %54 = vector.load %arg2[%c464, %c0_17] : memref<640x128xbf16, #tpu.memory_space<vmem>>, vector<16x128xbf16>
    %c480 = arith.constant 480 : index
    %c0_18 = arith.constant 0 : index
    %55 = vector.load %arg2[%c480, %c0_18] : memref<640x128xbf16, #tpu.memory_space<vmem>>, vector<16x128xbf16>
    %c496 = arith.constant 496 : index
    %c0_19 = arith.constant 0 : index
    %56 = vector.load %arg2[%c496, %c0_19] : memref<640x128xbf16, #tpu.memory_space<vmem>>, vector<16x128xbf16>
    %c512 = arith.constant 512 : index
    %c0_20 = arith.constant 0 : index
    %57 = vector.load %arg2[%c512, %c0_20] : memref<640x128xbf16, #tpu.memory_space<vmem>>, vector<16x128xbf16>
    %c528 = arith.constant 528 : index
    %c0_21 = arith.constant 0 : index
    %58 = vector.load %arg2[%c528, %c0_21] : memref<640x128xbf16, #tpu.memory_space<vmem>>, vector<16x128xbf16>
    %c544 = arith.constant 544 : index
    %c0_22 = arith.constant 0 : index
    %59 = vector.load %arg2[%c544, %c0_22] : memref<640x128xbf16, #tpu.memory_space<vmem>>, vector<16x128xbf16>
    %c560 = arith.constant 560 : index
    %c0_23 = arith.constant 0 : index
    %60 = vector.load %arg2[%c560, %c0_23] : memref<640x128xbf16, #tpu.memory_space<vmem>>, vector<16x128xbf16>
    %c576 = arith.constant 576 : index
    %c0_24 = arith.constant 0 : index
    %61 = vector.load %arg2[%c576, %c0_24] : memref<640x128xbf16, #tpu.memory_space<vmem>>, vector<64x128xbf16>
    %cst_25 = arith.constant 0.000000e+00 : bf16
    %62 = vector.broadcast %cst_25 : bf16 to vector<16x16xbf16>
    %63 = vector.extract_strided_slice %48 {offsets = [0, 0], sizes = [16, 128], strides = [1, 1]} : vector<32x128xf32> to vector<16x128xf32>
    %cst_26 = arith.constant dense<0.000000e+00> : vector<16x128xf32>
    %64 = tpu.matmul %62, %49, %cst_26 {dimension_numbers = #tpu.dot_dimension_numbers<[1], [0], [0], [1], [0, 0, 1, 1], [], []>} : vector<16x16xbf16>, vector<16x128xbf16>, vector<16x128xf32> -> vector<16x128xf32>
    %65 = arith.addf %63, %64 : vector<16x128xf32>
    %66 = math.tanh %65 : vector<16x128xf32>
    %67 = vector.extract_strided_slice %66 {offsets = [0, 0], sizes = [16, 16], strides = [1, 1]} : vector<16x128xf32> to vector<16x16xf32>
    %68 = arith.truncf %67 : vector<16x16xf32> to vector<16x16xbf16>
    %cst_27 = arith.constant dense<0.000000e+00> : vector<16x128xf32>
    %69 = tpu.matmul %68, %50, %cst_27 {dimension_numbers = #tpu.dot_dimension_numbers<[1], [0], [0], [1], [0, 0, 1, 1], [], []>} : vector<16x16xbf16>, vector<16x128xbf16>, vector<16x128xf32> -> vector<16x128xf32>
    %cst_28 = arith.constant dense<0.000000e+00> : vector<16x128xf32>
    %70 = tpu.matmul %62, %51, %cst_28 {dimension_numbers = #tpu.dot_dimension_numbers<[1], [0], [0], [1], [0, 0, 1, 1], [], []>} : vector<16x16xbf16>, vector<16x128xbf16>, vector<16x128xf32> -> vector<16x128xf32>
    %71 = arith.addf %69, %70 : vector<16x128xf32>
    %72 = arith.addf %71, %3 : vector<16x128xf32>
    %73 = math.tanh %72 : vector<16x128xf32>
    %74 = vector.extract_strided_slice %73 {offsets = [0, 0], sizes = [16, 16], strides = [1, 1]} : vector<16x128xf32> to vector<16x16xf32>
    %75 = arith.truncf %74 : vector<16x16xf32> to vector<16x16xbf16>
    %cst_29 = arith.constant dense<0.000000e+00> : vector<16x128xf32>
    %76 = tpu.matmul %75, %52, %cst_29 {dimension_numbers = #tpu.dot_dimension_numbers<[1], [0], [0], [1], [0, 0, 1, 1], [], []>} : vector<16x16xbf16>, vector<16x128xbf16>, vector<16x128xf32> -> vector<16x128xf32>
    %cst_30 = arith.constant dense<0.000000e+00> : vector<16x128xf32>
    %77 = tpu.matmul %62, %53, %cst_30 {dimension_numbers = #tpu.dot_dimension_numbers<[1], [0], [0], [1], [0, 0, 1, 1], [], []>} : vector<16x16xbf16>, vector<16x128xbf16>, vector<16x128xf32> -> vector<16x128xf32>
    %78 = arith.addf %76, %77 : vector<16x128xf32>
    %79 = arith.addf %78, %6 : vector<16x128xf32>
    %80 = math.tanh %79 : vector<16x128xf32>
    %81 = vector.extract_strided_slice %80 {offsets = [0, 0], sizes = [16, 16], strides = [1, 1]} : vector<16x128xf32> to vector<16x16xf32>
    %82 = arith.truncf %81 : vector<16x16xf32> to vector<16x16xbf16>
    %cst_31 = arith.constant dense<0.000000e+00> : vector<16x128xf32>
    %83 = tpu.matmul %82, %54, %cst_31 {dimension_numbers = #tpu.dot_dimension_numbers<[1], [0], [0], [1], [0, 0, 1, 1], [], []>} : vector<16x16xbf16>, vector<16x128xbf16>, vector<16x128xf32> -> vector<16x128xf32>
    %84 = vector.extract_strided_slice %83 {offsets = [9, 0], sizes = [1, 128], strides = [1, 1]} : vector<16x128xf32> to vector<1x128xf32>
    %85 = arith.addf %84, %19 : vector<1x128xf32>
    %86 = vector.shape_cast %85 : vector<1x128xf32> to vector<1x128xf32>
    %87 = vector.broadcast %86 : vector<1x128xf32> to vector<16x128xf32>
    %cst_32 = arith.constant dense<0.000000e+00> : vector<16x128xf32>
    %88 = tpu.matmul %62, %55, %cst_32 {dimension_numbers = #tpu.dot_dimension_numbers<[1], [0], [0], [1], [0, 0, 1, 1], [], []>} : vector<16x16xbf16>, vector<16x128xbf16>, vector<16x128xf32> -> vector<16x128xf32>
    %89 = arith.addf %87, %88 : vector<16x128xf32>
    %90 = math.tanh %89 : vector<16x128xf32>
    %91 = vector.extract_strided_slice %90 {offsets = [0, 0], sizes = [16, 16], strides = [1, 1]} : vector<16x128xf32> to vector<16x16xf32>
    %92 = arith.truncf %91 : vector<16x16xf32> to vector<16x16xbf16>
    %cst_33 = arith.constant dense<0.000000e+00> : vector<16x128xf32>
    %93 = tpu.matmul %92, %56, %cst_33 {dimension_numbers = #tpu.dot_dimension_numbers<[1], [0], [0], [1], [0, 0, 1, 1], [], []>} : vector<16x16xbf16>, vector<16x128xbf16>, vector<16x128xf32> -> vector<16x128xf32>
    %cst_34 = arith.constant dense<0.000000e+00> : vector<16x128xf32>
    %94 = tpu.matmul %62, %57, %cst_34 {dimension_numbers = #tpu.dot_dimension_numbers<[1], [0], [0], [1], [0, 0, 1, 1], [], []>} : vector<16x16xbf16>, vector<16x128xbf16>, vector<16x128xf32> -> vector<16x128xf32>
    %95 = arith.addf %93, %94 : vector<16x128xf32>
    %96 = arith.addf %95, %9 : vector<16x128xf32>
    %97 = math.tanh %96 : vector<16x128xf32>
    %98 = vector.extract_strided_slice %97 {offsets = [0, 0], sizes = [16, 16], strides = [1, 1]} : vector<16x128xf32> to vector<16x16xf32>
    %99 = arith.truncf %98 : vector<16x16xf32> to vector<16x16xbf16>
    %cst_35 = arith.constant dense<0.000000e+00> : vector<16x128xf32>
    %100 = tpu.matmul %99, %58, %cst_35 {dimension_numbers = #tpu.dot_dimension_numbers<[1], [0], [0], [1], [0, 0, 1, 1], [], []>} : vector<16x16xbf16>, vector<16x128xbf16>, vector<16x128xf32> -> vector<16x128xf32>
    %cst_36 = arith.constant dense<0.000000e+00> : vector<16x128xf32>
    %101 = tpu.matmul %62, %59, %cst_36 {dimension_numbers = #tpu.dot_dimension_numbers<[1], [0], [0], [1], [0, 0, 1, 1], [], []>} : vector<16x16xbf16>, vector<16x128xbf16>, vector<16x128xf32> -> vector<16x128xf32>
    %102 = arith.addf %100, %101 : vector<16x128xf32>
    %103 = arith.addf %102, %12 : vector<16x128xf32>
    %104 = math.tanh %103 : vector<16x128xf32>
    %105 = vector.extract_strided_slice %104 {offsets = [0, 0], sizes = [16, 16], strides = [1, 1]} : vector<16x128xf32> to vector<16x16xf32>
    %106 = arith.truncf %105 : vector<16x16xf32> to vector<16x16xbf16>
    %cst_37 = arith.constant dense<0.000000e+00> : vector<16x128xf32>
    %107 = tpu.matmul %106, %60, %cst_37 {dimension_numbers = #tpu.dot_dimension_numbers<[1], [0], [0], [1], [0, 0, 1, 1], [], []>} : vector<16x16xbf16>, vector<16x128xbf16>, vector<16x128xf32> -> vector<16x128xf32>
    %108 = arith.addf %107, %15 : vector<16x128xf32>
    %109 = math.tanh %108 : vector<16x128xf32>
    %110 = vector.extract_strided_slice %109 {offsets = [0, 0], sizes = [16, 64], strides = [1, 1]} : vector<16x128xf32> to vector<16x64xf32>
    %111 = arith.truncf %110 : vector<16x64xf32> to vector<16x64xbf16>
    %cst_38 = arith.constant dense<0.000000e+00> : vector<16x128xf32>
    %112 = tpu.matmul %111, %61, %cst_38 {dimension_numbers = #tpu.dot_dimension_numbers<[1], [0], [0], [1], [0, 0, 1, 1], [], []>} : vector<16x64xbf16>, vector<64x128xbf16>, vector<16x128xf32> -> vector<16x128xf32>
    %113 = arith.addf %112, %18 : vector<16x128xf32>
    %c0_39 = arith.constant 0 : index
    %c0_40 = arith.constant 0 : index
    %114 = vector.load %arg4[%c0_39, %c0_40] : memref<32x128xf32, #tpu.memory_space<vmem>>, vector<16x128xf32>
    tpu.vector_store %arg4[%c0_39, %c0_40], %113 {strides = array<i32>} : memref<32x128xf32, #tpu.memory_space<vmem>>, vector<16x128xf32>,
    %115 = vector.extract_strided_slice %48 {offsets = [16, 0], sizes = [16, 128], strides = [1, 1]} : vector<32x128xf32> to vector<16x128xf32>
    %cst_41 = arith.constant dense<0.000000e+00> : vector<16x128xf32>
    %116 = tpu.matmul %68, %49, %cst_41 {dimension_numbers = #tpu.dot_dimension_numbers<[1], [0], [0], [1], [0, 0, 1, 1], [], []>} : vector<16x16xbf16>, vector<16x128xbf16>, vector<16x128xf32> -> vector<16x128xf32>
    %117 = arith.addf %115, %116 : vector<16x128xf32>
    %118 = math.tanh %117 : vector<16x128xf32>
    %119 = vector.extract_strided_slice %118 {offsets = [0, 0], sizes = [16, 16], strides = [1, 1]} : vector<16x128xf32> to vector<16x16xf32>
    %120 = arith.truncf %119 : vector<16x16xf32> to vector<16x16xbf16>
    %cst_42 = arith.constant dense<0.000000e+00> : vector<16x128xf32>
    %121 = tpu.matmul %120, %50, %cst_42 {dimension_numbers = #tpu.dot_dimension_numbers<[1], [0], [0], [1], [0, 0, 1, 1], [], []>} : vector<16x16xbf16>, vector<16x128xbf16>, vector<16x128xf32> -> vector<16x128xf32>
    %cst_43 = arith.constant dense<0.000000e+00> : vector<16x128xf32>
    %122 = tpu.matmul %75, %51, %cst_43 {dimension_numbers = #tpu.dot_dimension_numbers<[1], [0], [0], [1], [0, 0, 1, 1], [], []>} : vector<16x16xbf16>, vector<16x128xbf16>, vector<16x128xf32> -> vector<16x128xf32>
    %123 = arith.addf %121, %122 : vector<16x128xf32>
    %124 = arith.addf %123, %3 : vector<16x128xf32>
    %125 = math.tanh %124 : vector<16x128xf32>
    %126 = vector.extract_strided_slice %125 {offsets = [0, 0], sizes = [16, 16], strides = [1, 1]} : vector<16x128xf32> to vector<16x16xf32>
    %127 = arith.truncf %126 : vector<16x16xf32> to vector<16x16xbf16>
    %cst_44 = arith.constant dense<0.000000e+00> : vector<16x128xf32>
    %128 = tpu.matmul %127, %52, %cst_44 {dimension_numbers = #tpu.dot_dimension_numbers<[1], [0], [0], [1], [0, 0, 1, 1], [], []>} : vector<16x16xbf16>, vector<16x128xbf16>, vector<16x128xf32> -> vector<16x128xf32>
    %cst_45 = arith.constant dense<0.000000e+00> : vector<16x128xf32>
    %129 = tpu.matmul %82, %53, %cst_45 {dimension_numbers = #tpu.dot_dimension_numbers<[1], [0], [0], [1], [0, 0, 1, 1], [], []>} : vector<16x16xbf16>, vector<16x128xbf16>, vector<16x128xf32> -> vector<16x128xf32>
    %130 = arith.addf %128, %129 : vector<16x128xf32>
    %131 = arith.addf %130, %6 : vector<16x128xf32>
    %132 = math.tanh %131 : vector<16x128xf32>
    %133 = vector.extract_strided_slice %132 {offsets = [0, 0], sizes = [16, 16], strides = [1, 1]} : vector<16x128xf32> to vector<16x16xf32>
    %134 = arith.truncf %133 : vector<16x16xf32> to vector<16x16xbf16>
    %cst_46 = arith.constant dense<0.000000e+00> : vector<16x128xf32>
    %135 = tpu.matmul %134, %54, %cst_46 {dimension_numbers = #tpu.dot_dimension_numbers<[1], [0], [0], [1], [0, 0, 1, 1], [], []>} : vector<16x16xbf16>, vector<16x128xbf16>, vector<16x128xf32> -> vector<16x128xf32>
    %136 = vector.extract_strided_slice %135 {offsets = [9, 0], sizes = [1, 128], strides = [1, 1]} : vector<16x128xf32> to vector<1x128xf32>
    %137 = arith.addf %136, %19 : vector<1x128xf32>
    %138 = vector.shape_cast %137 : vector<1x128xf32> to vector<1x128xf32>
    %139 = vector.broadcast %138 : vector<1x128xf32> to vector<16x128xf32>
    %cst_47 = arith.constant dense<0.000000e+00> : vector<16x128xf32>
    %140 = tpu.matmul %92, %55, %cst_47 {dimension_numbers = #tpu.dot_dimension_numbers<[1], [0], [0], [1], [0, 0, 1, 1], [], []>} : vector<16x16xbf16>, vector<16x128xbf16>, vector<16x128xf32> -> vector<16x128xf32>
    %141 = arith.addf %139, %140 : vector<16x128xf32>
    %142 = math.tanh %141 : vector<16x128xf32>
    %143 = vector.extract_strided_slice %142 {offsets = [0, 0], sizes = [16, 16], strides = [1, 1]} : vector<16x128xf32> to vector<16x16xf32>
    %144 = arith.truncf %143 : vector<16x16xf32> to vector<16x16xbf16>
    %cst_48 = arith.constant dense<0.000000e+00> : vector<16x128xf32>
    %145 = tpu.matmul %144, %56, %cst_48 {dimension_numbers = #tpu.dot_dimension_numbers<[1], [0], [0], [1], [0, 0, 1, 1], [], []>} : vector<16x16xbf16>, vector<16x128xbf16>, vector<16x128xf32> -> vector<16x128xf32>
    %cst_49 = arith.constant dense<0.000000e+00> : vector<16x128xf32>
    %146 = tpu.matmul %99, %57, %cst_49 {dimension_numbers = #tpu.dot_dimension_numbers<[1], [0], [0], [1], [0, 0, 1, 1], [], []>} : vector<16x16xbf16>, vector<16x128xbf16>, vector<16x128xf32> -> vector<16x128xf32>
    %147 = arith.addf %145, %146 : vector<16x128xf32>
    %148 = arith.addf %147, %9 : vector<16x128xf32>
    %149 = math.tanh %148 : vector<16x128xf32>
    %150 = vector.extract_strided_slice %149 {offsets = [0, 0], sizes = [16, 16], strides = [1, 1]} : vector<16x128xf32> to vector<16x16xf32>
    %151 = arith.truncf %150 : vector<16x16xf32> to vector<16x16xbf16>
    %cst_50 = arith.constant dense<0.000000e+00> : vector<16x128xf32>
    %152 = tpu.matmul %151, %58, %cst_50 {dimension_numbers = #tpu.dot_dimension_numbers<[1], [0], [0], [1], [0, 0, 1, 1], [], []>} : vector<16x16xbf16>, vector<16x128xbf16>, vector<16x128xf32> -> vector<16x128xf32>
    %cst_51 = arith.constant dense<0.000000e+00> : vector<16x128xf32>
    %153 = tpu.matmul %106, %59, %cst_51 {dimension_numbers = #tpu.dot_dimension_numbers<[1], [0], [0], [1], [0, 0, 1, 1], [], []>} : vector<16x16xbf16>, vector<16x128xbf16>, vector<16x128xf32> -> vector<16x128xf32>
    %154 = arith.addf %152, %153 : vector<16x128xf32>
    %155 = arith.addf %154, %12 : vector<16x128xf32>
    %156 = math.tanh %155 : vector<16x128xf32>
    %157 = vector.extract_strided_slice %156 {offsets = [0, 0], sizes = [16, 16], strides = [1, 1]} : vector<16x128xf32> to vector<16x16xf32>
    %158 = arith.truncf %157 : vector<16x16xf32> to vector<16x16xbf16>
    %cst_52 = arith.constant dense<0.000000e+00> : vector<16x128xf32>
    %159 = tpu.matmul %158, %60, %cst_52 {dimension_numbers = #tpu.dot_dimension_numbers<[1], [0], [0], [1], [0, 0, 1, 1], [], []>} : vector<16x16xbf16>, vector<16x128xbf16>, vector<16x128xf32> -> vector<16x128xf32>
    %160 = arith.addf %159, %15 : vector<16x128xf32>
    %161 = math.tanh %160 : vector<16x128xf32>
    %162 = vector.extract_strided_slice %161 {offsets = [0, 0], sizes = [16, 64], strides = [1, 1]} : vector<16x128xf32> to vector<16x64xf32>
    %163 = arith.truncf %162 : vector<16x64xf32> to vector<16x64xbf16>
    %cst_53 = arith.constant dense<0.000000e+00> : vector<16x128xf32>
    %164 = tpu.matmul %163, %61, %cst_53 {dimension_numbers = #tpu.dot_dimension_numbers<[1], [0], [0], [1], [0, 0, 1, 1], [], []>} : vector<16x64xbf16>, vector<64x128xbf16>, vector<16x128xf32> -> vector<16x128xf32>
    %165 = arith.addf %164, %18 : vector<16x128xf32>
    %c16 = arith.constant 16 : index
    %c0_54 = arith.constant 0 : index
    %166 = vector.load %arg4[%c16, %c0_54] : memref<32x128xf32, #tpu.memory_space<vmem>>, vector<16x128xf32>
    tpu.vector_store %arg4[%c16, %c0_54], %165 {strides = array<i32>} : memref<32x128xf32, #tpu.memory_space<vmem>>, vector<16x128xf32>,
    return
  }
}

</mosaic_0001>

<bundles_post_ra>
// kernel: hvrae_forward.1
= control target key start
LH: loop header
LB: loop body
LE: loop exit
PB: predicated region body
PF: predicated region fallthrough
CT: control target
= control target key end

     0   :  { %s2324_s14 = smov 64   ;;  %v20_v32 = vlaneseq  ;;  %vm291_vm0 = vcmask 523264   ;;  %vm2326_vm1 = vmmov 0   ;;  %vm538_vm2 = vcmask 130048   ;;  %s2792_s2 = inlined_call_operand.vmem [shape: bf16[640,128], index: 2, kind: input, shape index: {}]   ;;  %s2793_s0 = inlined_call_operand.vmem [shape: bf16[32,256], index: 0, kind: input, shape index: {}]   ;;  %s2794_s1 = inlined_call_operand.vmem [shape: bf16[32,64], index: 1, kind: input, shape index: {}]   ;;  %s2795_s3 = inlined_call_operand.vmem [shape: f32[16,128], index: 3, kind: input, shape index: {}]   ;;  %s2796_s4 = inlined_call_operand.vmem [shape: f32[32,128], index: 4, kind: output, shape index: {}]  }
   0x1   :  { %v2206_v0 = vld [vmem:[%s2792_s2 + $0x78] sm:$0xff]   ;;  %v2208_v2 = vld [vmem:[%s2792_s2 + $0x70] sm:$0xff]   ;;  %v2210_v4 = vld [vmem:[%s2792_s2 + $0x68] sm:$0xff]  }
   0x2   :  { %v2207_v1 = vld [vmem:[%s2792_s2 + $0x38] sm:$0xff]   ;;  %1902 = vmatprep.subr.bf16.mxu0 %v2206_v0  ;;  %v2209_v3 = vld [vmem:[%s2792_s2 + $0x30] sm:$0xff]   ;;  %v2211_v5 = vld [vmem:[%s2792_s2 + $0x28] sm:$0xff]   ;;  %v2433_v33 = vshrl.u32 %v20_v32, 7 }
   0x3   :  { %1903 = vmatpush3.bf16.msra.mxu0 %v2207_v1  ;;  %v2212_v6 = vld [vmem:[%s2792_s2 + $0x60] sm:$0xff]   ;;  %v2214_v8 = vld [vmem:[%s2792_s2 + $0x58] sm:$0xff]   ;;  %v2216_v10 = vld [vmem:[%s2792_s2 + $0x50] sm:$0xff]  }
   0x4   :  { %1904 = vmatprep.subr.bf16.mxu0 %v2208_v2  ;;  %v2213_v7 = vld [vmem:[%s2792_s2 + $0x20] sm:$0xff]   ;;  %v2215_v9 = vld [vmem:[%s2792_s2 + $0x18] sm:$0xff]   ;;  %v2217_v12 = vld [vmem:[%s2792_s2 + $0x10] sm:$0xff]   ;;  %v38_v34 = vsub.s32 0, %v2433_v33  ;;  %v2450_v60 = vsub.s32 1, %v2433_v33 }
   0x5   :  { %v2224_v11 = vld [vmem:[%s2793_s0 + $0x4] ss:$8 sps:$4 sm:$0xff]   ;;  %v2222_v17 = vld [vmem:[%s2793_s0] ss:$8 sps:$4 sm:$0xff]   ;;  %v2225_v18 = vld [vmem:[%s2793_s0 + $0x14] ss:$8 sps:$4 sm:$0xff]  }
   0x6   :  { %v2218_v13 = vld [vmem:[%s2792_s2 + $0x48] sm:$0xff]   ;;  %232 = vmatprep.mubr.bf16.mxu0 %v2224_v11  ;;  %v2220_v15 = vld [vmem:[%s2792_s2 + $0x40] sm:$0xff]   ;;  %v2227_v19 = vld [vmem:[%s2793_s0 + $0x10] ss:$8 sps:$4 sm:$0xff]  }
   0x7   :  { %1905 = vmatpush3.bf16.msra.mxu0 %v2209_v3  ;;  %v2219_v14 = vld [vmem:[%s2792_s2 + $0x8] sm:$0xff]   ;;  %v2221_v16 = vld [vmem:[%s2792_s2] sm:$0xff]   ;;  %v2228_v20 = vld [vmem:[%s2792_s2 + $0x98] sm:$0xff]  }
   0x8   :  { %1906 = vmatprep.subr.bf16.mxu0 %v2210_v4  ;;  %2000 = vmatprep.subr.bf16.mxu1 %v2228_v20  ;;  %v2229_v21 = vld [vmem:[%s2792_s2 + $0x90] sm:$0xff]   ;;  %v2230_v22 = vld [vmem:[%s2792_s2 + $0x88] sm:$0xff]   ;;  %v2231_v23 = vld [vmem:[%s2792_s2 + $0x80] sm:$0xff]  }
   0x9   :  { %2001 = vmatpush3.bf16.msra.mxu1 %v2228_v20  ;;  %v1894_v24 = vld [vmem:[%s2794_s1] sm:$0xff]   ;;  %v1901_v25 = vld [vmem:[%s2794_s1 + $0x8] sm:$0xff]   ;;  %v2232_v59 = vld [vmem:[%s2792_s2 + $0xb8] sm:$0xff]  }
   0xa   :  { %2002 = vmatprep.subr.bf16.mxu1 %v2229_v21  ;;  %v1895_v26 = vunpack.c.l.bf16 %v1894_v24  ;;  %v1896_v27 = vunpack.c.h.bf16 %v1894_v24  ;;  %v1899_v28 = vunpack.c.l.bf16 %v1901_v25  ;;  %v1900_v29 = vunpack.c.h.bf16 %v1901_v25  ;;  %v2439_v35 = vld [vmem:[%s2795_s3] sm:$0xff] }
   0xb   :  { %1907 = vmatpush3.bf16.msra.mxu0 %v2211_v5  ;;  %v83_v37 = vrot.slane %v2439_v35, %v38_v34  ;;  %v266_v61 = vrot.slane %v2439_v35, %v2450_v60  ;;  %v2325_v25 = vmov 0.0  }
   0xc   :  { %1908 = vmatprep.subr.bf16.mxu0 %v2212_v6  ;;  %v2196_v30 = vpack.i.bf16 %v1896_v27, %v1895_v26  ;;  %v2201_v31 = vpack.i.bf16 %v1900_v29, %v1899_v28 }
   0xd   :  { %2003 = vmatpush3.bf16.msra.mxu1 %v2229_v21 }
   0xe   :  { %2004 = vmatprep.subr.bf16.mxu1 %v2230_v22  ;;  %2197 = vrot.lane.b32.xlu0 %v2196_v30, %s2324_s14 }
   0xf   :  { %1909 = vmatpush3.bf16.msra.mxu0 %v2213_v7 }
  0x10   :  { %1910 = vmatprep.subr.bf16.mxu0 %v2214_v8 }
  0x11   :  { %2005 = vmatpush3.bf16.msra.mxu1 %v2230_v22 }
  0x12   :  { %2006 = vmatprep.subr.bf16.mxu1 %v2231_v23  ;;  %2202 = vrot.lane.b32.xlu0 %v2201_v31, %s2324_s14 }
  0x13   :  { %1911 = vmatpush3.bf16.msra.mxu0 %v2215_v9 }
  0x14   :  { %1912 = vmatprep.subr.bf16.mxu0 %v2216_v10 }
  0x15   :  { %2007 = vmatpush3.bf16.msra.mxu1 %v2231_v23 }
  0x16   :  { %2012 = vmatprep.subr.bf16.mxu1 %v2232_v59 }
  0x17   :  { %1913 = vmatpush3.bf16.msra.mxu0 %v2217_v12 }
  0x18   :  { %1914 = vmatprep.subr.bf16.mxu0 %v2218_v13  ;;  %v2233_v13 = vld [vmem:[%s2792_s2 + $0xb0] sm:$0xff]  }
  0x1b   :  { %1915 = vmatpush3.bf16.msra.mxu0 %v2219_v14 }
  0x1c   :  { %1916 = vmatprep.subr.bf16.mxu0 %v2220_v15 }
  0x1f   :  { %1917 = vmatpush3.bf16.msra.mxu0 %v2221_v16  ;;  %v2234_v16 = vld [vmem:[%s2792_s2 + $0xa8] sm:$0xff]  }
  0x20   :  { %2030 = vmatprep.subr.bf16.mxu0 %v2325_v25 }
  0x22   :  { %233 = vmatmul.mubr.bf16.vlgmr.msra.gmra.mxu0 %v2222_v17 }
  0x23   :  { %240 = vmatprep.mubr.bf16.mxu0 %v2225_v18 }
  0x2a   :  { %241 = vmatmul.mubr.bf16.gmra.mxu0 %v2227_v19  ;;  %v2235_v19 = vld [vmem:[%s2792_s2 + $0xa0] sm:$0xff]  }
  0x2b   :  { %2032 = vmatprep.mubr.msk.bf16.mxu0 %vm2326_vm1, %v2325_v25 }
  0x80   :  { %v2198_v11 = vpop.permute.xlu0 %2197 }
  0x81   :  { %v2199_v20 = vunpack.i.l.bf16 %v2198_v11  ;;  %v2200_v26 = vunpack.i.h.bf16 %v2198_v11  ;;  %v22_v11 = vsub.s32 3, %v2433_v33 }
  0x84   :  { %v2203_v17 = vpop.permute.xlu0 %2202 }
  0x85   :  { %v2204_v18 = vunpack.i.l.bf16 %v2203_v17  ;;  %v2205_v29 = vunpack.i.h.bf16 %v2203_v17 }
  0xe2   :  { %v1918_v36 = vpop.f32.mrf.mxu0 }
  0xe4   :  { %v1919_v38 = vpop.f32.mrf.mxu0 }
  0xe5   :  { %v1920_v39 = vadd.f32 %v1919_v38, %v1918_v36 }
  0xe6   :  { %v1921_v40 = vpop.f32.mrf.mxu0 }
  0xe7   :  { %v235_v41 = vadd.f32 %v1920_v39, %v83_v37 }
  0xe8   :  { %v1922_v42 = vpop.f32.mrf.mxu0 }
  0xe9   :  { %v1923_v43 = vadd.f32 %v1922_v42, %v1921_v40  ;;  %2252 = vtanh.f32 %v235_v41 }
  0xea   :  { %v1924_v44 = vpop.f32.mrf.mxu0 }
  0xeb   :  { %v238_v45 = vadd.f32 %v1923_v43, %v83_v37 }
  0xec   :  { %v1925_v46 = vpop.f32.mrf.mxu0 }
  0xed   :  { %2254 = vtanh.f32 %v238_v45  ;;  %v1926_v47 = vadd.f32 %v1925_v46, %v1924_v44  ;;  %v2475_v44 = vld [vmem:[%s2792_s2 + $0xc0] sm:$0xff]   ;;  %v2327_v46 = vmov 0  }
  0xee   :  { %v1927_v48 = vpop.f32.mrf.mxu0 }
  0xef   :  { %v243_v49 = vadd.f32 %v1926_v47, %v83_v37  ;;  %v2488_v47 = vld [vmem:[%s2792_s2 + $0xd0] sm:$0xff]  }
  0xf0   :  { %v1928_v50 = vpop.f32.mrf.mxu0  ;;  %2031 = vmatpush3.bf16.msra.mxu0 %v2488_v47 }
  0xf1   :  { %v1929_v51 = vadd.f32 %v1928_v50, %v1927_v48  ;;  %2256 = vtanh.f32 %v243_v49  ;;  %v2493_v48 = vld [vmem:[%s2792_s2 + $0xc8] sm:$0xff]   ;;  %2042 = vmatprep.subr.bf16.mxu0 %v2325_v25  ;;  %v419_v49 = vsub.s32 2, %v2433_v33 }
  0xf3   :  { %v246_v52 = vadd.f32 %v1929_v51, %v83_v37  ;;  %2033 = vmatmul.mubr.bf16.vlgmr.msra.gmra.mxu0 %v2327_v46  ;;  %v420_v50 = vrot.slane %v2439_v35, %v419_v49 }
  0xf4   :  { %2044 = vmatprep.mubr.msk.bf16.mxu0 %vm2326_vm1, %v2325_v25 }
  0xf5   :  { %2258 = vtanh.f32 %v246_v52 }
  0xf6   :  { %v2253_v53 = vpop.eup %2252 }
  0xfa   :  { %v2255_v54 = vpop.eup %2254 }
  0xfb   :  { %v253_v55 = vpack.c.bf16 %v2255_v54, %v2253_v53 }
  0xfd   :  { %2008 = vmatprep.mubr.msk.bf16.mxu1 %vm291_vm0, %v253_v55 }
  0xfe   :  { %v2257_v56 = vpop.eup %2256 }
 0x102   :  { %v2259_v57 = vpop.eup %2258 }
 0x103   :  { %v254_v58 = vpack.c.bf16 %v2259_v57, %v2257_v56 }
 0x105   :  { %2009 = vmatmul.mubr.msk.bf16.vlgmr.msra.gmra.mxu1 %vm291_vm0, %v254_v58 }
 0x106   :  { %2013 = vmatpush3.bf16.msra.mxu1 %v2232_v59 }
 0x107   :  { %2014 = vmatprep.subr.bf16.mxu1 %v2233_v13 }
 0x10a   :  { %2015 = vmatpush3.bf16.msra.mxu1 %v2233_v13 }
 0x10b   :  { %2016 = vmatprep.subr.bf16.mxu1 %v2234_v16 }
 0x10e   :  { %2017 = vmatpush3.bf16.msra.mxu1 %v2234_v16 }
 0x10f   :  { %2018 = vmatprep.subr.bf16.mxu1 %v2235_v19 }
 0x112   :  { %2019 = vmatpush3.bf16.msra.mxu1 %v2235_v19 }
 0x113   :  { %2024 = vmatprep.subr.bf16.mxu1 %v2325_v25 }
 0x1c5   :  { %v2010_v62 = vpop.f32.mrf.mxu1 }
 0x1c6   :  { %v341_v63 = vadd.f32 %v2010_v62, %v266_v61 }
 0x1c7   :  { %v332_v0 = vpop.f32.mrf.mxu1 }
 0x1c8   :  { %v349_v1 = vmul.f32 0.5, %v341_v63  ;;  %v333_v2 = vadd.f32 %v332_v0, %v266_v61 }
 0x1c9   :  { %v2011_v3 = vpop.f32.mrf.mxu1 }
 0x1ca   :  { %v355_v4 = vmul.f32 1.442695, %v349_v1  ;;  %v347_v5 = vmul.f32 0.5, %v333_v2  ;;  %v344_v6 = vadd.f32 %v2011_v3, %v266_v61 }
 0x1cb   :  { %v335_v7 = vpop.f32.mrf.mxu1 }
 0x1cc   :  { %2260 = vpow2.f32 %v355_v4  ;;  %v351_v8 = vmul.f32 1.442695, %v347_v5  ;;  %v350_v9 = vmul.f32 0.5, %v344_v6  ;;  %v336_v10 = vadd.f32 %v335_v7, %v266_v61  ;;  %v628_v5 = vpop.f32.mrf.mxu0 }
 0x1ce   :  { %2262 = vpow2.f32 %v351_v8  ;;  %v348_v12 = vmul.f32 0.5, %v336_v10  ;;  %v357_v14 = vmul.f32 1.442695, %v350_v9  ;;  %v2517_v9 = vld [vmem:[%s2792_s2 + $0xe0] sm:$0xff]  }
 0x1cf   :  { %2043 = vmatpush3.bf16.msra.mxu0 %v2517_v9 }
 0x1d0   :  { %v353_v15 = vmul.f32 1.442695, %v348_v12  ;;  %2054 = vmatprep.subr.bf16.mxu0 %v2325_v25  ;;  %v2533_v12 = vrot.slane %v2439_v35, %v22_v11 }
 0x1d2   :  { %2264 = vpow2.f32 %v353_v15  ;;  %2045 = vmatmul.mubr.bf16.vlgmr.msra.gmra.mxu0 %v2327_v46 }
 0x1d3   :  { %2266 = vpow2.f32 %v357_v14  ;;  %2056 = vmatprep.mubr.msk.bf16.mxu0 %vm2326_vm1, %v2325_v25 }
 0x1d9   :  { %v2261_v21 = vpop.eup %2260 }
 0x1da   :  { %v385_v22 = vmul.f32 %v2261_v21, %v2204_v18 }
 0x1db   :  { %v2263_v23 = vpop.eup %2262 }
 0x1dc   :  { %395 = vrot.lane.b32.xlu0 %v385_v22, %s2324_s14  ;;  %v383_v24 = vmul.f32 %v2263_v23, %v2199_v20 }
 0x1de   :  { %391 = vrot.lane.b32.xlu1 %v383_v24, %s2324_s14 }
 0x1df   :  { %v2265_v27 = vpop.eup %2264 }
 0x1e0   :  { %v384_v28 = vmul.f32 %v2265_v27, %v2200_v26  ;;  %v2267_v30 = vpop.eup %2266 }
 0x1e1   :  { %v386_v31 = vmul.f32 %v2267_v30, %v2205_v29  ;;  %v2546_v29 = vld [vmem:[%s2792_s2 + $0xe8] sm:$0xff]   ;;  %v2551_v30 = vld [vmem:[%s2792_s2 + $0xf0] sm:$0xff]  }
 0x1e2   :  { %393 = vrot.lane.b32.xlu1 %v384_v28, %s2324_s14  ;;  %2055 = vmatpush3.bf16.msra.mxu0 %v2546_v29 }
 0x1e3   :  { %2066 = vmatprep.subr.bf16.mxu0 %v2325_v25 }
 0x1e6   :  { %397 = vrot.lane.b32.xlu1 %v386_v31, %s2324_s14  ;;  %v26_v31 = vsub.s32 4, %v2433_v33 }
 0x24e   :  { %v396_v39 = vpop.permute.xlu0 %395 }
 0x24f   :  { %v405_v42 = vadd.f32 %v396_v39, %v341_v63 }
 0x250   :  { %v392_v32 = vpop.permute.xlu1 %391 }
 0x251   :  { %v403_v37 = vadd.f32 %v392_v32, %v333_v2  ;;  %v2562_v32 = vrot.slane %v2439_v35, %v26_v31 }
 0x254   :  { %v394_v36 = vpop.permute.xlu1 %393 }
 0x255   :  { %v404_v38 = vadd.f32 %v394_v36, %v336_v10  ;;  %v2522_v10 = vld [vmem:[%s2792_s2 + $0xd8] sm:$0xff]  }
 0x257   :  { %v407_v40 = vpack.c.bf16 %v404_v38, %v403_v37 }
 0x258   :  { %v398_v41 = vpop.permute.xlu1 %397 }
 0x259   :  { %v406_v43 = vadd.f32 %v398_v41, %v344_v6  ;;  %2020 = vmatprep.mubr.msk.bf16.mxu1 %vm291_vm0, %v407_v40  ;;  %v2034_v6 = vpop.f32.mrf.mxu0 }
 0x25b   :  { %v408_v45 = vpack.c.bf16 %v406_v43, %v405_v42  ;;  %v631_v7 = vpop.f32.mrf.mxu0 }
 0x25d   :  { %2021 = vmatmul.mubr.msk.bf16.vlgmr.msra.gmra.mxu1 %vm291_vm0, %v408_v45  ;;  %v2035_v8 = vpop.f32.mrf.mxu0 }
 0x25e   :  { %2025 = vmatpush3.bf16.msra.mxu1 %v2475_v44  ;;  %2026 = vmatprep.mubr.msk.bf16.mxu1 %vm2326_vm1, %v2325_v25 }
 0x25f   :  { %2036 = vmatprep.subr.bf16.mxu1 %v2325_v25 }
 0x265   :  { %2027 = vmatmul.mubr.bf16.vlgmr.msra.gmra.mxu1 %v2327_v46 }
 0x266   :  { %2038 = vmatprep.mubr.msk.bf16.mxu1 %vm2326_vm1, %v2325_v25  ;;  %2037 = vmatpush3.bf16.msra.mxu1 %v2493_v48 }
 0x267   :  { %2048 = vmatprep.subr.bf16.mxu1 %v2325_v25 }
 0x292   :  { %v730_v24 = vpop.f32.mrf.mxu0 }
 0x294   :  { %v2046_v26 = vpop.f32.mrf.mxu0 }
 0x296   :  { %v733_v27 = vpop.f32.mrf.mxu0 }
 0x298   :  { %v2047_v28 = vpop.f32.mrf.mxu0 }
 0x31d   :  { %v2022_v51 = vpop.f32.mrf.mxu1 }
 0x31e   :  { %v2504_v52 = vadd.f32 %v2022_v51, %v420_v50 }
 0x31f   :  { %v485_v53 = vpop.f32.mrf.mxu1 }
 0x320   :  { %v486_v57 = vadd.f32 %v485_v53, %v420_v50 }
 0x321   :  { %v2023_v54 = vpop.f32.mrf.mxu1 }
 0x322   :  { %v2506_v55 = vadd.f32 %v2023_v54, %v420_v50 }
 0x323   :  { %v488_v56 = vpop.f32.mrf.mxu1 }
 0x324   :  { %v489_v62 = vadd.f32 %v488_v56, %v420_v50 }
 0x325   :  { %v576_v58 = vpop.f32.mrf.mxu1 }
 0x326   :  { %v583_v59 = vadd.f32 %v576_v58, %v486_v57  ;;  %v2575_v57 = vld [vmem:[%s2792_s2 + $0x100] sm:$0xff]   ;;  %v2580_v58 = vld [vmem:[%s2792_s2 + $0xf8] sm:$0xff]  }
 0x327   :  { %v2028_v61 = vpop.f32.mrf.mxu1 }
 0x328   :  { %2268 = vtanh.f32 %v583_v59  ;;  %v842_v61 = vrot.slane %v2439_v35, 4 }
 0x329   :  { %v579_v63 = vpop.f32.mrf.mxu1 }
 0x32a   :  { %v584_v0 = vadd.f32 %v579_v63, %v489_v62 }
 0x32b   :  { %v2029_v1 = vpop.f32.mrf.mxu1 }
 0x32c   :  { %2270 = vtanh.f32 %v584_v0 }
 0x335   :  { %v2269_v2 = vpop.eup %2268 }
 0x339   :  { %v2271_v3 = vpop.eup %2270 }
 0x33a   :  { %v2508_v4 = vpack.c.bf16 %v2271_v3, %v2269_v2 }
 0x33c   :  { %2039 = vmatmul.mubr.msk.bf16.vlgmr.msra.gmra.mxu1 %vm538_vm2, %v2508_v4 }
 0x33d   :  { %2050 = vmatprep.mubr.msk.bf16.mxu1 %vm2326_vm1, %v2325_v25  ;;  %2049 = vmatpush3.bf16.msra.mxu1 %v2522_v10 }
 0x33e   :  { %2060 = vmatprep.subr.bf16.mxu1 %v2325_v25 }
 0x3fc   :  { %v678_v13 = vpop.f32.mrf.mxu1 }
 0x3fd   :  { %v679_v14 = vadd.f32 %v678_v13, %v628_v5 }
 0x3fe   :  { %v2040_v15 = vpop.f32.mrf.mxu1 }
 0x3ff   :  { %v685_v16 = vadd.f32 %v679_v14, %v2533_v12 }
 0x400   :  { %v681_v17 = vpop.f32.mrf.mxu1 }
 0x401   :  { %v682_v18 = vadd.f32 %v681_v17, %v631_v7  ;;  %2272 = vtanh.f32 %v685_v16  ;;  %v2602_v16 = vld [vmem:[%s2792_s2 + $0x110] sm:$0xff]   ;;  %v2607_v17 = vld [vmem:[%s2792_s2 + $0x108] sm:$0xff]  }
 0x402   :  { %v2041_v19 = vpop.f32.mrf.mxu1 }
 0x403   :  { %v686_v20 = vadd.f32 %v682_v18, %v2533_v12  ;;  %v30_v18 = vsub.s32 6, %v2433_v33 }
 0x405   :  { %2274 = vtanh.f32 %v686_v20  ;;  %v2618_v19 = vrot.slane %v2439_v35, %v30_v18 }
 0x40e   :  { %v2273_v21 = vpop.eup %2272 }
 0x412   :  { %v2275_v22 = vpop.eup %2274 }
 0x413   :  { %v2537_v23 = vpack.c.bf16 %v2275_v22, %v2273_v21 }
 0x415   :  { %2051 = vmatmul.mubr.msk.bf16.vlgmr.msra.gmra.mxu1 %vm538_vm2, %v2537_v23 }
 0x416   :  { %2062 = vmatprep.mubr.msk.bf16.mxu1 %vm2326_vm1, %v2325_v25  ;;  %2061 = vmatpush3.bf16.msra.mxu1 %v2551_v30 }
 0x417   :  { %2072 = vmatprep.subr.bf16.mxu1 %v2325_v25 }
 0x41d   :  { %2063 = vmatmul.mubr.bf16.vlgmr.msra.gmra.mxu1 %v2327_v46 }
 0x41e   :  { %2074 = vmatprep.mubr.msk.bf16.mxu1 %vm2326_vm1, %v2325_v25  ;;  %2073 = vmatpush3.bf16.msra.mxu1 %v2580_v58 }
 0x41f   :  { %2084 = vmatprep.subr.bf16.mxu1 %v2325_v25 }
 0x4d5   :  { %v780_v36 = vpop.f32.mrf.mxu1 }
 0x4d6   :  { %v781_v37 = vadd.f32 %v780_v36, %v730_v24 }
 0x4d7   :  { %v2052_v38 = vpop.f32.mrf.mxu1 }
 0x4d8   :  { %v787_v39 = vadd.f32 %v781_v37, %v2562_v32 }
 0x4d9   :  { %v783_v40 = vpop.f32.mrf.mxu1 }
 0x4da   :  { %v784_v41 = vadd.f32 %v783_v40, %v733_v27  ;;  %2276 = vtanh.f32 %v787_v39 }
 0x4db   :  { %v2053_v42 = vpop.f32.mrf.mxu1 }
 0x4dc   :  { %v788_v43 = vadd.f32 %v784_v41, %v2562_v32  ;;  %v2631_v42 = vld [vmem:[%s2792_s2 + $0x118] sm:$0xff]  }
 0x4dd   :  { %v889_v51 = vpop.f32.mrf.mxu1 }
 0x4de   :  { %2278 = vtanh.f32 %v788_v43  ;;  %v34_v43 = vsub.s32 7, %v2433_v33 }
 0x4df   :  { %v2064_v53 = vpop.f32.mrf.mxu1 }
 0x4e1   :  { %v892_v54 = vpop.f32.mrf.mxu1 }
 0x4e3   :  { %v2065_v56 = vpop.f32.mrf.mxu1 }
 0x4e7   :  { %v2277_v45 = vpop.eup %2276 }
 0x4eb   :  { %v2279_v49 = vpop.eup %2278 }
 0x4ec   :  { %v2566_v50 = vpack.c.bf16 %v2279_v49, %v2277_v45  ;;  %v2637_v45 = vrot.slane %v2439_v35, %v34_v43 }
 0x4ee   :  { %2057 = vmatmul.mubr.msk.bf16.vlgmr.msra.gmra.mxu0 %vm538_vm2, %v2566_v50 }
 0x4ef   :  { %2068 = vmatprep.mubr.msk.bf16.mxu0 %vm2326_vm1, %v2325_v25  ;;  %2067 = vmatpush3.bf16.msra.mxu0 %v2575_v57 }
 0x4f0   :  { %2078 = vmatprep.subr.bf16.mxu0 %v2325_v25 }
 0x4f6   :  { %2069 = vmatmul.mubr.bf16.vlgmr.msra.gmra.mxu0 %v2327_v46 }
 0x4f7   :  { %2080 = vmatprep.mubr.msk.bf16.mxu0 %vm2326_vm1, %v2325_v25  ;;  %2079 = vmatpush3.bf16.msra.mxu0 %v2602_v16 }
 0x4f8   :  { %2090 = vmatprep.subr.bf16.mxu0 %v2325_v25 }
 0x4fe   :  { %2081 = vmatmul.mubr.bf16.vlgmr.msra.gmra.mxu0 %v2327_v46 }
 0x4ff   :  { %2092 = vmatprep.mubr.msk.bf16.mxu0 %vm2326_vm1, %v2325_v25  ;;  %2091 = vmatpush3.bf16.msra.mxu0 %v2631_v42 }
 0x500   :  { %2108 = vmatprep.subr.bf16.mxu0 %v2325_v25 }
 0x5ae   :  { %v835_v59 = vpop.f32.mrf.mxu0 }
 0x5b0   :  { %v2058_v62 = vpop.f32.mrf.mxu0 }
 0x5b2   :  { %v837_v63 = vpop.f32.mrf.mxu0 }
 0x5b3   :  { %v844_v0 = vadd.f32 %v842_v61, %v837_v63 }
 0x5b4   :  { %v2059_v1 = vpop.f32.mrf.mxu0 }
 0x5b5   :  { %v848_v2 = vrot.slane %v844_v0, %v2450_v60 }
 0x5b6   :  { %v941_v11 = vpop.f32.mrf.mxu0 }
 0x5b7   :  { %v896_v3 = vadd.f32 %v889_v51, %v848_v2  ;;  %v897_v5 = vadd.f32 %v892_v54, %v848_v2 }
 0x5b8   :  { %v2070_v13 = vpop.f32.mrf.mxu0 }
 0x5b9   :  { %2280 = vtanh.f32 %v896_v3 }
 0x5ba   :  { %2282 = vtanh.f32 %v897_v5  ;;  %v944_v14 = vpop.f32.mrf.mxu0 }
 0x5bc   :  { %v2071_v15 = vpop.f32.mrf.mxu0 }
 0x5be   :  { %v1043_v38 = vpop.f32.mrf.mxu0 }
 0x5c0   :  { %v2082_v39 = vpop.f32.mrf.mxu0 }
 0x5c2   :  { %v1046_v40 = vpop.f32.mrf.mxu0 }
 0x5c4   :  { %v2083_v41 = vpop.f32.mrf.mxu0 }
 0x5c6   :  { %v2281_v6 = vpop.eup %2280 }
 0x5c7   :  { %v2283_v7 = vpop.eup %2282 }
 0x5c8   :  { %v2593_v8 = vpack.c.bf16 %v2283_v7, %v2281_v6 }
 0x5ca   :  { %2075 = vmatmul.mubr.msk.bf16.vlgmr.msra.gmra.mxu1 %vm538_vm2, %v2593_v8 }
 0x5cb   :  { %2086 = vmatprep.mubr.msk.bf16.mxu1 %vm2326_vm1, %v2325_v25  ;;  %2085 = vmatpush3.bf16.msra.mxu1 %v2607_v17 }
 0x5cc   :  { %2096 = vmatprep.subr.bf16.mxu1 %v2325_v25 }
 0x68a   :  { %v991_v20 = vpop.f32.mrf.mxu1 }
 0x68b   :  { %v992_v21 = vadd.f32 %v991_v20, %v941_v11 }
 0x68c   :  { %v2076_v22 = vpop.f32.mrf.mxu1 }
 0x68d   :  { %v998_v24 = vadd.f32 %v992_v21, %v2618_v19 }
 0x68e   :  { %v994_v26 = vpop.f32.mrf.mxu1 }
 0x68f   :  { %v995_v27 = vadd.f32 %v994_v26, %v944_v14  ;;  %2284 = vtanh.f32 %v998_v24 }
 0x690   :  { %v2077_v28 = vpop.f32.mrf.mxu1 }
 0x691   :  { %v999_v31 = vadd.f32 %v995_v27, %v2618_v19 }
 0x693   :  { %2286 = vtanh.f32 %v999_v31 }
 0x69c   :  { %v2285_v46 = vpop.eup %2284 }
 0x6a0   :  { %v2287_v36 = vpop.eup %2286 }
 0x6a1   :  { %v2622_v37 = vpack.c.bf16 %v2287_v36, %v2285_v46 }
 0x6a3   :  { %2087 = vmatmul.mubr.msk.bf16.vlgmr.msra.gmra.mxu1 %vm538_vm2, %v2622_v37 }
 0x6a4   :  { %2104 = vmatprep.mubr.msk.bf16.mxu1 %vm2326_vm1, %v2325_v25 }
 0x763   :  { %v1093_v49 = vpop.f32.mrf.mxu1 }
 0x764   :  { %v1094_v51 = vadd.f32 %v1093_v49, %v1043_v38 }
 0x765   :  { %v2088_v53 = vpop.f32.mrf.mxu1 }
 0x766   :  { %v1100_v54 = vadd.f32 %v1094_v51, %v2637_v45 }
 0x767   :  { %v1096_v56 = vpop.f32.mrf.mxu1 }
 0x768   :  { %v1097_v59 = vadd.f32 %v1096_v56, %v1046_v40  ;;  %2288 = vtanh.f32 %v1100_v54 }
 0x769   :  { %v2089_v62 = vpop.f32.mrf.mxu1 }
 0x76a   :  { %v1101_v63 = vadd.f32 %v1097_v59, %v2637_v45 }
 0x76c   :  { %2290 = vtanh.f32 %v1101_v63 }
 0x775   :  { %v2289_v0 = vpop.eup %2288 }
 0x779   :  { %v2291_v1 = vpop.eup %2290 }
 0x77a   :  { %v2641_v2 = vpack.c.bf16 %v2291_v1, %v2289_v0 }
 0x77c   :  { %2093 = vmatmul.mubr.msk.bf16.vlgmr.msra.gmra.mxu0 %vm538_vm2, %v2641_v2 }
 0x77d   :  { %2109 = vmatpush3.bf16.msra.mxu0 %v2475_v44  ;;  %2110 = vmatprep.mubr.msk.bf16.mxu0 %vm2326_vm1, %v2325_v25  ;;  %v2670_v44 = vld [vmem:[%s2792_s2 + $0x138] sm:$0xff]  }
 0x77e   :  { %2114 = vmatprep.subr.bf16.mxu0 %v2325_v25  ;;  %2097 = vmatpush3.bf16.msra.mxu1 %v2670_v44 }
 0x77f   :  { %2098 = vmatprep.subr.bf16.mxu1 %v2325_v25 }
 0x784   :  { %2111 = vmatmul.mubr.msk.bf16.vlgmr.msra.gmra.mxu0 %vm538_vm2, %v2508_v4  ;;  %v2684_v4 = vld [vmem:[%s2792_s2 + $0x128] sm:$0xff]  }
 0x785   :  { %2115 = vmatpush3.bf16.msra.mxu0 %v2488_v47  ;;  %2116 = vmatprep.mubr.msk.bf16.mxu0 %vm2326_vm1, %v2325_v25  ;;  %v2677_v47 = vld [vmem:[%s2792_s2 + $0x130] sm:$0xff]  }
 0x786   :  { %2126 = vmatprep.subr.bf16.mxu0 %v2325_v25  ;;  %2099 = vmatpush3.bf16.msra.mxu1 %v2677_v47 }
 0x787   :  { %2100 = vmatprep.subr.bf16.mxu1 %v2325_v25 }
 0x78a   :  { %2101 = vmatpush3.bf16.msra.mxu1 %v2684_v4 }
 0x78b   :  { %2102 = vmatprep.subr.bf16.mxu1 %v2325_v25 }
 0x78c   :  { %2117 = vmatmul.mubr.msk.bf16.vlgmr.msra.gmra.mxu0 %vm538_vm2, %v2537_v23  ;;  %v19_v23 = vld [vmem:[%s2795_s3 + $0x8] sm:$0xff] }
 0x78d   :  { %2127 = vmatpush3.bf16.msra.mxu0 %v2517_v9  ;;  %2128 = vmatprep.mubr.msk.bf16.mxu0 %vm2326_vm1, %v2325_v25  ;;  %v2691_v9 = vld [vmem:[%s2792_s2 + $0x120] sm:$0xff]  }
 0x78e   :  { %2138 = vmatprep.subr.bf16.mxu0 %v2325_v25  ;;  %2103 = vmatpush3.bf16.msra.mxu1 %v2691_v9 }
 0x78f   :  { %2120 = vmatprep.subr.bf16.mxu1 %v2325_v25 }
 0x794   :  { %2129 = vmatmul.mubr.msk.bf16.vlgmr.msra.gmra.mxu0 %vm538_vm2, %v2566_v50 }
 0x795   :  { %2139 = vmatpush3.bf16.msra.mxu0 %v2546_v29  ;;  %2140 = vmatprep.mubr.msk.bf16.mxu0 %vm2326_vm1, %v2325_v25  ;;  %v2700_v29 = vrot.slane %v19_v23, %v38_v34 }
 0x796   :  { %2150 = vmatprep.subr.bf16.mxu0 %v2325_v25 }
 0x83c   :  { %v1148_v50 = vpop.f32.mrf.mxu0 }
 0x83d   :  { %v1149_v3 = vadd.f32 %v1148_v50, %v2700_v29 }
 0x83e   :  { %v2094_v5 = vpop.f32.mrf.mxu0 }
 0x83f   :  { %2292 = vtanh.f32 %v1149_v3 }
 0x840   :  { %v1151_v6 = vpop.f32.mrf.mxu0 }
 0x841   :  { %v1152_v7 = vadd.f32 %v1151_v6, %v2700_v29 }
 0x842   :  { %v2095_v11 = vpop.f32.mrf.mxu0 }
 0x843   :  { %2294 = vtanh.f32 %v1152_v7 }
 0x844   :  { %v1262_v13 = vpop.f32.mrf.mxu0 }
 0x845   :  { %v1269_v14 = vadd.f32 %v1262_v13, %v2504_v52 }
 0x846   :  { %v2112_v15 = vpop.f32.mrf.mxu0 }
 0x847   :  { %2296 = vtanh.f32 %v1269_v14 }
 0x848   :  { %v1265_v18 = vpop.f32.mrf.mxu0 }
 0x849   :  { %v1270_v20 = vadd.f32 %v1265_v18, %v2506_v55 }
 0x84a   :  { %v2113_v33 = vpop.f32.mrf.mxu0 }
 0x84b   :  { %2298 = vtanh.f32 %v1270_v20 }
 0x84c   :  { %v1308_v34 = vpop.f32.mrf.mxu0  ;;  %v2293_v22 = vpop.eup %2292 }
 0x84e   :  { %v2118_v21 = vpop.f32.mrf.mxu0 }
 0x850   :  { %v2295_v24 = vpop.eup %2294  ;;  %v1311_v26 = vpop.f32.mrf.mxu0 }
 0x851   :  { %v1157_v27 = vpack.c.bf16 %v2295_v24, %v2293_v22 }
 0x852   :  { %v2119_v28 = vpop.f32.mrf.mxu0 }
 0x853   :  { %2105 = vmatmul.mubr.msk.bf16.vlgmr.msra.gmra.mxu1 %vm291_vm0, %v1157_v27 }
 0x854   :  { %2121 = vmatpush3.bf16.msra.mxu1 %v2493_v48  ;;  %v1398_v31 = vpop.f32.mrf.mxu0  ;;  %2122 = vmatprep.mubr.msk.bf16.mxu1 %vm2326_vm1, %v2325_v25  ;;  %v2297_v55 = vpop.eup %2296  ;;  %v2717_v48 = vrot.slane %v19_v23, %v2450_v60 }
 0x855   :  { %2132 = vmatprep.subr.bf16.mxu1 %v2325_v25 }
 0x856   :  { %v2130_v52 = vpop.f32.mrf.mxu0 }
 0x858   :  { %v2299_v46 = vpop.eup %2298  ;;  %v1401_v36 = vpop.f32.mrf.mxu0 }
 0x859   :  { %v1273_v38 = vpack.c.bf16 %v2299_v46, %v2297_v55 }
 0x85a   :  { %v2131_v39 = vpop.f32.mrf.mxu0 }
 0x85b   :  { %2123 = vmatmul.mubr.msk.bf16.vlgmr.msra.gmra.mxu1 %vm538_vm2, %v1273_v38 }
 0x85c   :  { %2133 = vmatpush3.bf16.msra.mxu1 %v2522_v10  ;;  %2134 = vmatprep.mubr.msk.bf16.mxu1 %vm2326_vm1, %v2325_v25 }
 0x85d   :  { %2144 = vmatprep.subr.bf16.mxu1 %v2325_v25 }
 0x913   :  { %v1219_v40 = vpop.f32.mrf.mxu1 }
 0x914   :  { %v1220_v41 = vadd.f32 %v1219_v40, %v2717_v48 }
 0x915   :  { %v2106_v43 = vpop.f32.mrf.mxu1 }
 0x916   :  { %1226 = vst [vmem:[%s2796_s4] sm:$0xff] %v1220_v41 }
 0x917   :  { %v1222_v49 = vpop.f32.mrf.mxu1 }
 0x918   :  { %v1223_v51 = vadd.f32 %v1222_v49, %v2717_v48 }
 0x919   :  { %v2107_v10 = vpop.f32.mrf.mxu1 }
 0x91a   :  { %1227 = vst [vmem:[%s2796_s4 + $0x8] sm:$0xff] %v1223_v51 }
 0x91b   :  { %v1352_v53 = vpop.f32.mrf.mxu1 }
 0x91c   :  { %v1353_v54 = vadd.f32 %v1352_v53, %v1308_v34 }
 0x91d   :  { %v2124_v56 = vpop.f32.mrf.mxu1 }
 0x91e   :  { %v1359_v59 = vadd.f32 %v1353_v54, %v2533_v12 }
 0x91f   :  { %v1355_v62 = vpop.f32.mrf.mxu1 }
 0x920   :  { %v1356_v63 = vadd.f32 %v1355_v62, %v1311_v26  ;;  %2300 = vtanh.f32 %v1359_v59 }
 0x921   :  { %v2125_v0 = vpop.f32.mrf.mxu1 }
 0x922   :  { %v1360_v1 = vadd.f32 %v1356_v63, %v2533_v12 }
 0x924   :  { %2302 = vtanh.f32 %v1360_v1 }
 0x92d   :  { %v2301_v23 = vpop.eup %2300 }
 0x931   :  { %v2303_v50 = vpop.eup %2302 }
 0x932   :  { %v1363_v3 = vpack.c.bf16 %v2303_v50, %v2301_v23 }
 0x934   :  { %2135 = vmatmul.mubr.msk.bf16.vlgmr.msra.gmra.mxu1 %vm538_vm2, %v1363_v3 }
 0x935   :  { %2145 = vmatpush3.bf16.msra.mxu1 %v2551_v30  ;;  %2146 = vmatprep.mubr.msk.bf16.mxu1 %vm2326_vm1, %v2325_v25 }
 0x936   :  { %2156 = vmatprep.subr.bf16.mxu1 %v2325_v25 }
 0x93c   :  { %2147 = vmatmul.mubr.msk.bf16.vlgmr.msra.gmra.mxu1 %vm538_vm2, %v2593_v8 }
 0x93d   :  { %2157 = vmatpush3.bf16.msra.mxu1 %v2580_v58  ;;  %2158 = vmatprep.mubr.msk.bf16.mxu1 %vm2326_vm1, %v2325_v25 }
 0x93e   :  { %2168 = vmatprep.subr.bf16.mxu1 %v2325_v25 }
 0x9f4   :  { %v1442_v12 = vpop.f32.mrf.mxu1 }
 0x9f5   :  { %v1443_v5 = vadd.f32 %v1442_v12, %v1398_v31 }
 0x9f6   :  { %v2136_v6 = vpop.f32.mrf.mxu1 }
 0x9f7   :  { %v1449_v30 = vadd.f32 %v1443_v5, %v2562_v32 }
 0x9f8   :  { %v1445_v7 = vpop.f32.mrf.mxu1 }
 0x9f9   :  { %v1446_v11 = vadd.f32 %v1445_v7, %v1401_v36  ;;  %2304 = vtanh.f32 %v1449_v30 }
 0x9fa   :  { %v2137_v13 = vpop.f32.mrf.mxu1 }
 0x9fb   :  { %v1450_v14 = vadd.f32 %v1446_v11, %v2562_v32 }
 0x9fc   :  { %v1536_v15 = vpop.f32.mrf.mxu1 }
 0x9fd   :  { %2306 = vtanh.f32 %v1450_v14 }
 0x9fe   :  { %v2148_v8 = vpop.f32.mrf.mxu1 }
 0xa00   :  { %v1539_v58 = vpop.f32.mrf.mxu1 }
 0xa02   :  { %v2149_v18 = vpop.f32.mrf.mxu1 }
 0xa06   :  { %v2305_v20 = vpop.eup %2304 }
 0xa0a   :  { %v2307_v33 = vpop.eup %2306 }
 0xa0b   :  { %v1453_v34 = vpack.c.bf16 %v2307_v33, %v2305_v20 }
 0xa0d   :  { %2141 = vmatmul.mubr.msk.bf16.vlgmr.msra.gmra.mxu0 %vm538_vm2, %v1453_v34 }
 0xa0e   :  { %2151 = vmatpush3.bf16.msra.mxu0 %v2575_v57  ;;  %2152 = vmatprep.mubr.msk.bf16.mxu0 %vm2326_vm1, %v2325_v25 }
 0xa0f   :  { %2162 = vmatprep.subr.bf16.mxu0 %v2325_v25 }
 0xa15   :  { %2153 = vmatmul.mubr.msk.bf16.vlgmr.msra.gmra.mxu0 %vm538_vm2, %v2622_v37 }
 0xa16   :  { %2163 = vmatpush3.bf16.msra.mxu0 %v2602_v16  ;;  %2164 = vmatprep.mubr.msk.bf16.mxu0 %vm2326_vm1, %v2325_v25 }
 0xa17   :  { %2174 = vmatprep.subr.bf16.mxu0 %v2325_v25 }
 0xa1d   :  { %2165 = vmatmul.mubr.msk.bf16.vlgmr.msra.gmra.mxu0 %vm538_vm2, %v2641_v2 }
 0xa1e   :  { %2175 = vmatpush3.bf16.msra.mxu0 %v2631_v42  ;;  %2176 = vmatprep.mubr.msk.bf16.mxu0 %vm2326_vm1, %v2325_v25 }
 0xacd   :  { %v1491_v32 = vpop.f32.mrf.mxu0 }
 0xacf   :  { %v2142_v57 = vpop.f32.mrf.mxu0 }
 0xad1   :  { %v1493_v21 = vpop.f32.mrf.mxu0 }
 0xad2   :  { %v1497_v37 = vadd.f32 %v1493_v21, %v842_v61 }
 0xad3   :  { %v2143_v16 = vpop.f32.mrf.mxu0 }
 0xad4   :  { %v1501_v22 = vrot.slane %v1497_v37, %v2450_v60 }
 0xad5   :  { %v1582_v24 = vpop.f32.mrf.mxu0 }
 0xad6   :  { %v1543_v26 = vadd.f32 %v1536_v15, %v1501_v22  ;;  %v1544_v27 = vadd.f32 %v1539_v58, %v1501_v22 }
 0xad7   :  { %v2154_v28 = vpop.f32.mrf.mxu0 }
 0xad8   :  { %2308 = vtanh.f32 %v1543_v26 }
 0xad9   :  { %2310 = vtanh.f32 %v1544_v27  ;;  %v1585_v2 = vpop.f32.mrf.mxu0 }
 0xadb   :  { %v2155_v42 = vpop.f32.mrf.mxu0 }
 0xadd   :  { %v1672_v31 = vpop.f32.mrf.mxu0 }
 0xadf   :  { %v2166_v52 = vpop.f32.mrf.mxu0 }
 0xae1   :  { %v1675_v55 = vpop.f32.mrf.mxu0 }
 0xae3   :  { %v2167_v46 = vpop.f32.mrf.mxu0 }
 0xae5   :  { %v2309_v36 = vpop.eup %2308 }
 0xae6   :  { %v2311_v38 = vpop.eup %2310 }
 0xae7   :  { %v1547_v39 = vpack.c.bf16 %v2311_v38, %v2309_v36 }
 0xae9   :  { %2159 = vmatmul.mubr.msk.bf16.vlgmr.msra.gmra.mxu1 %vm538_vm2, %v1547_v39 }
 0xaea   :  { %2169 = vmatpush3.bf16.msra.mxu1 %v2607_v17  ;;  %2170 = vmatprep.mubr.msk.bf16.mxu1 %vm2326_vm1, %v2325_v25 }
 0xaeb   :  { %2180 = vmatprep.subr.bf16.mxu1 %v2325_v25 }
 0xba9   :  { %v1626_v35 = vpop.f32.mrf.mxu1 }
 0xbaa   :  { %v1627_v60 = vadd.f32 %v1626_v35, %v1582_v24 }
 0xbab   :  { %v2160_v61 = vpop.f32.mrf.mxu1 }
 0xbac   :  { %v1633_v40 = vadd.f32 %v1627_v60, %v2618_v19 }
 0xbad   :  { %v1629_v41 = vpop.f32.mrf.mxu1 }
 0xbae   :  { %v1630_v43 = vadd.f32 %v1629_v41, %v1585_v2  ;;  %2312 = vtanh.f32 %v1633_v40 }
 0xbaf   :  { %v2161_v49 = vpop.f32.mrf.mxu1 }
 0xbb0   :  { %v1634_v51 = vadd.f32 %v1630_v43, %v2618_v19 }
 0xbb2   :  { %2314 = vtanh.f32 %v1634_v51 }
 0xbbb   :  { %v2313_v10 = vpop.eup %2312 }
 0xbbf   :  { %v2315_v53 = vpop.eup %2314 }
 0xbc0   :  { %v1637_v17 = vpack.c.bf16 %v2315_v53, %v2313_v10 }
 0xbc2   :  { %2171 = vmatmul.mubr.msk.bf16.vlgmr.msra.gmra.mxu1 %vm538_vm2, %v1637_v17 }
 0xbc3   :  { %2181 = vmatpush3.bf16.msra.mxu1 %v2670_v44  ;;  %2188 = vmatprep.mubr.msk.bf16.mxu1 %vm2326_vm1, %v2325_v25 }
 0xbc4   :  { %2182 = vmatprep.subr.bf16.mxu1 %v2325_v25 }
 0xbc7   :  { %2183 = vmatpush3.bf16.msra.mxu1 %v2677_v47 }
 0xbc8   :  { %2184 = vmatprep.subr.bf16.mxu1 %v2325_v25 }
 0xbcb   :  { %2185 = vmatpush3.bf16.msra.mxu1 %v2684_v4 }
 0xbcc   :  { %2186 = vmatprep.subr.bf16.mxu1 %v2325_v25 }
 0xbcf   :  { %2187 = vmatpush3.bf16.msra.mxu1 %v2691_v9 }
 0xc82   :  { %v1716_v19 = vpop.f32.mrf.mxu1 }
 0xc83   :  { %v1717_v54 = vadd.f32 %v1716_v19, %v1672_v31 }
 0xc84   :  { %v2172_v56 = vpop.f32.mrf.mxu1 }
 0xc85   :  { %v1723_v44 = vadd.f32 %v1717_v54, %v2637_v45 }
 0xc86   :  { %v1719_v59 = vpop.f32.mrf.mxu1 }
 0xc87   :  { %v1720_v62 = vadd.f32 %v1719_v59, %v1675_v55  ;;  %2316 = vtanh.f32 %v1723_v44 }
 0xc88   :  { %v2173_v63 = vpop.f32.mrf.mxu1 }
 0xc89   :  { %v1724_v0 = vadd.f32 %v1720_v62, %v2637_v45 }
 0xc8b   :  { %2318 = vtanh.f32 %v1724_v0 }
 0xc94   :  { %v2317_v47 = vpop.eup %2316 }
 0xc98   :  { %v2319_v1 = vpop.eup %2318 }
 0xc99   :  { %v1727_v23 = vpack.c.bf16 %v2319_v1, %v2317_v47 }
 0xc9b   :  { %2177 = vmatmul.mubr.msk.bf16.vlgmr.msra.gmra.mxu0 %vm538_vm2, %v1727_v23 }
 0xd5b   :  { %v1765_v25 = vpop.f32.mrf.mxu0 }
 0xd5c   :  { %v1766_v4 = vadd.f32 %v1765_v25, %v2700_v29 }
 0xd5d   :  { %v2178_v9 = vpop.f32.mrf.mxu0 }
 0xd5e   :  { %2320 = vtanh.f32 %v1766_v4 }
 0xd5f   :  { %v1768_v50 = vpop.f32.mrf.mxu0 }
 0xd60   :  { %v1769_v3 = vadd.f32 %v1768_v50, %v2700_v29 }
 0xd61   :  { %v2179_v12 = vpop.f32.mrf.mxu0 }
 0xd62   :  { %2322 = vtanh.f32 %v1769_v3 }
 0xd6b   :  { %v2321_v5 = vpop.eup %2320 }
 0xd6f   :  { %v2323_v6 = vpop.eup %2322 }
 0xd70   :  { %v1774_v45 = vpack.c.bf16 %v2323_v6, %v2321_v5 }
 0xd72   :  { %2189 = vmatmul.mubr.msk.bf16.vlgmr.msra.gmra.mxu1 %vm291_vm0, %v1774_v45 }
 0xe32   :  { %v1812_v30 = vpop.f32.mrf.mxu1 }
 0xe33   :  { %v1813_v7 = vadd.f32 %v1812_v30, %v2717_v48 }
 0xe34   :  { %v2190_v11 = vpop.f32.mrf.mxu1 }
 0xe35   :  { %1819 = vst [vmem:[%s2796_s4 + $0x10] sm:$0xff] %v1813_v7 }
 0xe36   :  { %v1815_v13 = vpop.f32.mrf.mxu1 }
 0xe37   :  { %v1816_v14 = vadd.f32 %v1815_v13, %v2717_v48 }
 0xe38   :  { %v2191_v29 = vpop.f32.mrf.mxu1 }
 0xe39   :  { %1820 = vst [vmem:[%s2796_s4 + $0x18] sm:$0xff] %v1816_v14 }

</bundles_post_ra>
